<compile_context>
chip_gen: v7x
topology: tpu7x:2x2x1
jax: 0.10.0
libtpu: 0.0.40
codegen_flags: <defaults>
</compile_context>

<pallas_src>
import functools

import numpy as np

import jax
import jax.numpy as jnp
from jax.experimental import pallas as pl
from jax.experimental.pallas import tpu as pltpu


def _adaptive_net_kernel(emb_ref, ys_ref, wm_ref, w1e_ref, w1y_ref, b1_ref,
                         w2_ref, b2_ref, o_ref, *, relu, t_tile, n_max):
    # emb_ref : [t_tile*n_max, 2E] bf16   (pre-flattened in the wrapper)
    # ys_ref  : [t_tile*n_max, 1]  f32    (rating column)
    # wm_ref  : [t_tile*n_max, 1]  f32    (per-row weight = valid / count)
    # w1e_ref : [2E, ctx] bf16    w1y_ref, b1_ref : [1, ctx] f32
    # w2_ref  : [ctx, p_dim] bf16         b2_ref  : [1, p_dim] f32
    # o_ref   : [t_tile//4, 4*p_dim] f32  (lane-dense packed output)
    ctx = w1e_ref.shape[-1]
    p_dim = w2_ref.shape[-1]

    # ctx_fc: embedding columns on the MXU (bf16 x bf16 -> f32 accumulate);
    # the rating column is a rank-1 VPU update (replaces torch.cat / K=33).
    h = jnp.dot(emb_ref[...], w1e_ref[...],
                preferred_element_type=jnp.float32)              # [T*N, ctx]
    h = h + ys_ref[...] * w1y_ref[...] + b1_ref[...]

    # F.leaky_relu (default negative_slope = 0.01)
    h = jnp.where(h > 0, h, 0.01 * h)

    # Masked mean over the support rows: per-row weight (valid/count) then a
    # sublane-aligned reduction (n_max is a multiple of 8, so this reshape
    # never crosses (8,128) tiles).
    h = h * wm_ref[...]
    m = jnp.sum(h.reshape(t_tile, n_max, ctx), axis=1)           # [t_tile, ctx]

    # out_layer, batched across the task tile (one MXU call).
    out = jnp.dot(m.astype(jnp.bfloat16), w2_ref[...],
                  preferred_element_type=jnp.float32) + b2_ref[...]
    if relu:
        out = jnp.maximum(out, 0.0)

    # Lane-dense store: pack 4 tasks per output row so the HBM store is
    # >= 128 lanes wide instead of per-task 32/128-lane masked stores.
    # packed[r, j*p_dim + c] = out[j*(t_tile//4) + r, c]
    tq = t_tile // 4
    o_ref[...] = jnp.concatenate(
        [out[j * tq:(j + 1) * tq, :] for j in range(4)], axis=1)


def adaptive_net_forward(emb, ys, counts, w1, b1, w2, b2, *, relu=0,
                         t_tile=None):
    """Batched AdaptiveNet forward.

    emb    : [T, N, 2*E] f32   (rows at index >= counts[t] are padding)
    ys     : [T, N]      f32
    counts : [T] int     valid rows per task (count==0 yields relu(b2))
    w1     : [2*E + 1, ctx]  (transposed torch Linear weight), b1: [ctx]
    w2     : [ctx, p_dim],   b2: [p_dim]
    returns: [T, 4, p_dim // 4]
    """
    T, n_in, e2 = emb.shape
    ctx = w1.shape[1]
    p_dim = w2.shape[1]
    assert w1.shape[0] == e2 + 1 and p_dim % 4 == 0

    # --- pad the support-set axis to a multiple of 8 (sublane alignment keeps
    # the in-kernel reshape of h free for any bucket size) ---
    n_max = max(8, ((n_in + 7) // 8) * 8)
    if n_max != n_in:
        emb = jnp.pad(emb, ((0, 0), (0, n_max - n_in), (0, 0)))
        ys = jnp.pad(ys, ((0, 0), (0, n_max - n_in)))

    # --- task tile: one grid step for small/medium T (step overhead dominates
    # there); 256-task tiles only once T is genuinely large ---
    if t_tile is None:
        t_tile = T if T <= 512 else 256
    t_tile = min(t_tile, 512)                      # VMEM-safe on v5e/v7x too
    if t_tile >= T:
        t_tile = ((max(T, 4) + 3) // 4) * 4        # single step: %4 for packing
    else:
        t_tile = ((t_tile + 31) // 32) * 32        # multi step: (8,128) on out
    t_pad = ((T + t_tile - 1) // t_tile) * t_tile
    num_steps = t_pad // t_tile

    counts = counts.astype(jnp.int32)
    if t_pad != T:
        emb = jnp.pad(emb, ((0, t_pad - T), (0, 0), (0, 0)))
        ys = jnp.pad(ys, ((0, t_pad - T), (0, 0)))
        counts = jnp.pad(counts, ((0, t_pad - T),))   # padded tasks: count 0

    # Per-row weight = (row < count) / max(count, 1)   (guards count == 0).
    row_ids = jnp.arange(n_max, dtype=jnp.int32)[None, :]
    valid = (row_ids < counts[:, None]).astype(jnp.float32)
    wmask = valid / jnp.maximum(counts, 1).astype(jnp.float32)[:, None]

    # Flatten so the kernel never reshapes its largest operand; cast the MXU
    # operands to bf16 (accumulation stays f32 inside the kernel).
    emb_flat = emb.reshape(t_pad * n_max, e2).astype(jnp.bfloat16)
    ys_flat = ys.reshape(t_pad * n_max, 1).astype(jnp.float32)
    wm_flat = wmask.reshape(t_pad * n_max, 1).astype(jnp.float32)
    w1e = w1[:e2, :].astype(jnp.bfloat16)            # embedding columns
    w1y = w1[e2:e2 + 1, :].astype(jnp.float32)       # rating-column row
    w2_bf = w2.astype(jnp.bfloat16)

    kern = functools.partial(_adaptive_net_kernel, relu=relu,
                             t_tile=t_tile, n_max=n_max)
    rows = t_tile * n_max

    out_packed = pl.pallas_call(
        kern,
        out_shape=jax.ShapeDtypeStruct((t_pad // 4, 4 * p_dim), jnp.float32),
        grid=(num_steps,),
        in_specs=[
            pl.BlockSpec((rows, e2), lambda t: (t, 0)),      # emb (flat, bf16)
            pl.BlockSpec((rows, 1), lambda t: (t, 0)),       # ys  (flat)
            pl.BlockSpec((rows, 1), lambda t: (t, 0)),       # wmask (flat)
            pl.BlockSpec((e2, ctx), lambda t: (0, 0)),       # w1 (emb cols)
            pl.BlockSpec((1, ctx), lambda t: (0, 0)),        # w1 (ys row)
            pl.BlockSpec((1, ctx), lambda t: (0, 0)),        # b1
            pl.BlockSpec((ctx, p_dim), lambda t: (0, 0)),    # w2
            pl.BlockSpec((1, p_dim), lambda t: (0, 0)),      # b2
        ],
        out_specs=pl.BlockSpec((t_tile // 4, 4 * p_dim), lambda t: (t, 0)),
        compiler_params=pltpu.CompilerParams(
            dimension_semantics=(("parallel",) if num_steps > 1
                                 else ("arbitrary",))),
    )(emb_flat, ys_flat, wm_flat, w1e, w1y,
      b1.reshape(1, -1).astype(jnp.float32), w2_bf,
      b2.reshape(1, -1).astype(jnp.float32))

    # Unpack (t_pad//4, 4*p_dim) -> (t_pad, p_dim): packed[r, j*p_dim + c]
    # holds task (step*t_tile + j*(t_tile//4) + r). Tiny wrapper-side relayout.
    tq = t_tile // 4
    out = (out_packed.reshape(num_steps, tq, 4, p_dim)
           .transpose(0, 2, 1, 3)
           .reshape(t_pad, p_dim))[:T]

    # per-task x.view(4, -1)
    return out.reshape(T, 4, p_dim // 4)


def _reference_single(emb_t, ys_t, n, w1, b1, w2, b2, relu):
    """Pure-JAX f32 reference matching the PyTorch module for one task."""
    x = jnp.concatenate([emb_t[:n], ys_t[:n, None]], axis=1)
    h = x @ w1 + b1
    h = jnp.where(h > 0, h, 0.01 * h)
    m = jnp.mean(h, axis=0)
    o = m @ w2 + b2
    if relu:
        o = jnp.maximum(o, 0.0)
    return o.reshape(4, -1)


if __name__ == "__main__":
    # Small shapes consistent with the module.
    embedding_dim = 16
    p_dim = 32                       # must be divisible by 4 for .view(4, -1)
    relu_flag = 1
    T = 16                           # number of tasks batched into one call
    N_MAX = 8                        # padded support-set size bucket

    in_dim = 2 * embedding_dim + 1   # emb (2*E) + rating column
    ctx_dim = 8 * embedding_dim      # context_dim

    key = jax.random.PRNGKey(0)
    k1, k2, k3, k4, k5, k6 = jax.random.split(key, 6)

    # Param init mimicking torch.nn.Linear default (uniform +-1/sqrt(fan_in)),
    # stored transposed ([in, out]) for x @ W.
    bnd1 = 1.0 / (in_dim ** 0.5)
    w1 = jax.random.uniform(k1, (in_dim, ctx_dim), jnp.float32, -bnd1, bnd1)
    b1 = jax.random.uniform(k2, (ctx_dim,), jnp.float32, -bnd1, bnd1)
    bnd2 = 1.0 / (ctx_dim ** 0.5)
    w2 = jax.random.uniform(k3, (ctx_dim, p_dim), jnp.float32, -bnd2, bnd2)
    b2 = jax.random.uniform(k4, (p_dim,), jnp.float32, -bnd2, bnd2)

    # Example batched inputs (rows past counts[t] are padding; exercised by the
    # per-row weight mask).
    emb = jax.random.normal(k5, (T, N_MAX, 2 * embedding_dim), jnp.float32)
    ys = jax.random.normal(k6, (T, N_MAX), jnp.float32)
    counts = jnp.array([8, 5, 8, 7, 6, 8, 8, 4, 8, 8, 3, 8, 5, 8, 8, 6],
                       dtype=jnp.int32)

    out = adaptive_net_forward(emb, ys, counts, w1, b1, w2, b2, relu=relu_flag)
    out = jax.block_until_ready(out)
    assert out.shape == (T, 4, p_dim // 4), out.shape

    # Sanity check vs a pure-JAX f32 reference of the PyTorch forward, per task
    # (bf16 MXU operands stay well inside the 2e-2 tolerance).
    ref = jnp.stack([
        _reference_single(emb[t], ys[t], int(counts[t]), w1, b1, w2, b2,
                          relu_flag)
        for t in range(T)
    ])
    np.testing.assert_allclose(np.asarray(out), np.asarray(ref),
                               rtol=2e-2, atol=2e-2)

    print("KERNEL_OK")
</pallas_src>

<mosaic_0001>
module attributes {stable_mosaic.version = 11 : i64} {
  func.func @_adaptive_net_kernel(%arg0: i32, %arg1: memref<128x32xbf16, #tpu.memory_space<vmem>>, %arg2: memref<128x1xf32, #tpu.memory_space<vmem>>, %arg3: memref<128x1xf32, #tpu.memory_space<vmem>>, %arg4: memref<32x128xbf16, #tpu.memory_space<vmem>>, %arg5: memref<1x128xf32, #tpu.memory_space<vmem>>, %arg6: memref<1x128xf32, #tpu.memory_space<vmem>>, %arg7: memref<128x32xbf16, #tpu.memory_space<vmem>>, %arg8: memref<1x32xf32, #tpu.memory_space<vmem>>, %arg9: memref<4x128xf32, #tpu.memory_space<vmem>>) attributes {dimension_semantics = [#tpu.dimension_semantics<arbitrary>], iteration_bounds = array<i64: 1>, scalar_prefetch = 0 : i64, scratch_operands = 0 : i64, tpu.core_type = #tpu.core_type<tc>, window_params = [{transform_indices = @transform_0, window_bounds = array<i64: 128, 32>}, {transform_indices = @transform_1, window_bounds = array<i64: 128, 1>}, {transform_indices = @transform_2, window_bounds = array<i64: 128, 1>}, {pipeline_mode = #tpu.pipeline_mode<synchronous>, transform_indices = @transform_3, window_bounds = array<i64: 32, 128>}, {pipeline_mode = #tpu.pipeline_mode<synchronous>, transform_indices = @transform_4, window_bounds = array<i64: 1, 128>}, {pipeline_mode = #tpu.pipeline_mode<synchronous>, transform_indices = @transform_5, window_bounds = array<i64: 1, 128>}, {pipeline_mode = #tpu.pipeline_mode<synchronous>, transform_indices = @transform_6, window_bounds = array<i64: 128, 32>}, {pipeline_mode = #tpu.pipeline_mode<synchronous>, transform_indices = @transform_7, window_bounds = array<i64: 1, 32>}, {transform_indices = @transform_8, window_bounds = array<i64: 4, 128>}]} {
    %c0 = arith.constant 0 : index
    %c0_0 = arith.constant 0 : index
    %0 = vector.load %arg1[%c0, %c0_0] : memref<128x32xbf16, #tpu.memory_space<vmem>>, vector<128x32xbf16>
    %c0_1 = arith.constant 0 : index
    %c0_2 = arith.constant 0 : index
    %1 = vector.load %arg4[%c0_1, %c0_2] : memref<32x128xbf16, #tpu.memory_space<vmem>>, vector<32x128xbf16>
    %cst = arith.constant dense<0.000000e+00> : vector<128x128xf32>
    %2 = tpu.matmul %0, %1, %cst {dimension_numbers = #tpu.dot_dimension_numbers<[1], [0], [0], [1], [0, 0, 1, 1], [], []>} : vector<128x32xbf16>, vector<32x128xbf16>, vector<128x128xf32> -> vector<128x128xf32>
    %c0_3 = arith.constant 0 : index
    %c0_4 = arith.constant 0 : index
    %3 = vector.load %arg2[%c0_3, %c0_4] : memref<128x1xf32, #tpu.memory_space<vmem>>, vector<128x1xf32>
    %c0_5 = arith.constant 0 : index
    %c0_6 = arith.constant 0 : index
    %4 = vector.load %arg5[%c0_5, %c0_6] : memref<1x128xf32, #tpu.memory_space<vmem>>, vector<1x128xf32>
    %5 = vector.broadcast %3 : vector<128x1xf32> to vector<128x128xf32>
    %6 = vector.broadcast %4 : vector<1x128xf32> to vector<128x128xf32>
    %7 = arith.mulf %5, %6 : vector<128x128xf32>
    %8 = arith.addf %2, %7 : vector<128x128xf32>
    %c0_7 = arith.constant 0 : index
    %c0_8 = arith.constant 0 : index
    %9 = vector.load %arg6[%c0_7, %c0_8] : memref<1x128xf32, #tpu.memory_space<vmem>>, vector<1x128xf32>
    %10 = vector.broadcast %9 : vector<1x128xf32> to vector<128x128xf32>
    %11 = arith.addf %8, %10 : vector<128x128xf32>
    %cst_9 = arith.constant 0.000000e+00 : f32
    %12 = vector.broadcast %cst_9 : f32 to vector<128x128xf32>
    %13 = arith.cmpf ogt, %11, %12 : vector<128x128xf32>
    %cst_10 = arith.constant 0.00999999977 : f32
    %14 = vector.broadcast %cst_10 : f32 to vector<128x128xf32>
    %15 = arith.mulf %14, %11 : vector<128x128xf32>
    %16 = arith.select %13, %11, %15 : vector<128x128xi1>, vector<128x128xf32>
    %c0_11 = arith.constant 0 : index
    %c0_12 = arith.constant 0 : index
    %17 = vector.load %arg3[%c0_11, %c0_12] : memref<128x1xf32, #tpu.memory_space<vmem>>, vector<128x1xf32>
    %18 = vector.broadcast %17 : vector<128x1xf32> to vector<128x128xf32>
    %19 = arith.mulf %16, %18 : vector<128x128xf32>
    %20 = vector.shape_cast %19 : vector<128x128xf32> to vector<16x8x128xf32>
    %cst_13 = arith.constant dense<0.000000e+00> : vector<16x128xf32>
    %21 = vector.multi_reduction <add>, %20, %cst_13 [1] : vector<16x8x128xf32> to vector<16x128xf32>
    %22 = arith.truncf %21 : vector<16x128xf32> to vector<16x128xbf16>
    %c0_14 = arith.constant 0 : index
    %c0_15 = arith.constant 0 : index
    %23 = vector.load %arg7[%c0_14, %c0_15] : memref<128x32xbf16, #tpu.memory_space<vmem>>, vector<128x32xbf16>
    %cst_16 = arith.constant dense<0.000000e+00> : vector<16x32xf32>
    %24 = tpu.matmul %22, %23, %cst_16 {dimension_numbers = #tpu.dot_dimension_numbers<[1], [0], [0], [1], [0, 0, 1, 1], [], []>} : vector<16x128xbf16>, vector<128x32xbf16>, vector<16x32xf32> -> vector<16x32xf32>
    %c0_17 = arith.constant 0 : index
    %c0_18 = arith.constant 0 : index
    %25 = vector.load %arg8[%c0_17, %c0_18] : memref<1x32xf32, #tpu.memory_space<vmem>>, vector<1x32xf32>
    %26 = vector.broadcast %25 : vector<1x32xf32> to vector<16x32xf32>
    %27 = arith.addf %24, %26 : vector<16x32xf32>
    %cst_19 = arith.constant 0.000000e+00 : f32
    %28 = vector.broadcast %cst_19 : f32 to vector<16x32xf32>
    %29 = arith.maximumf %27, %28 : vector<16x32xf32>
    %30 = vector.extract_strided_slice %29 {offsets = [0, 0], sizes = [4, 32], strides = [1, 1]} : vector<16x32xf32> to vector<4x32xf32>
    %31 = vector.extract_strided_slice %29 {offsets = [4, 0], sizes = [4, 32], strides = [1, 1]} : vector<16x32xf32> to vector<4x32xf32>
    %32 = vector.extract_strided_slice %29 {offsets = [8, 0], sizes = [4, 32], strides = [1, 1]} : vector<16x32xf32> to vector<4x32xf32>
    %33 = vector.extract_strided_slice %29 {offsets = [12, 0], sizes = [4, 32], strides = [1, 1]} : vector<16x32xf32> to vector<4x32xf32>
    %34 = tpu.concatenate %30, %31, %32, %33 in 1 : vector<4x32xf32>, vector<4x32xf32>, vector<4x32xf32>, vector<4x32xf32> -> vector<4x128xf32>
    %c0_20 = arith.constant 0 : index
    %c0_21 = arith.constant 0 : index
    %35 = vector.load %arg9[%c0_20, %c0_21] : memref<4x128xf32, #tpu.memory_space<vmem>>, vector<4x128xf32>
    tpu.vector_store %arg9[%c0_20, %c0_21], %34 {strides = array<i32>} : memref<4x128xf32, #tpu.memory_space<vmem>>, vector<4x128xf32>,
    return
  }
  func.func @transform_0(%arg0: i32) -> (i32, i32) {
    %c0_i32 = arith.constant 0 : i32
    %c0_i32_0 = arith.constant 0 : i32
    return %arg0, %c0_i32 : i32, i32
  }
  func.func @transform_1(%arg0: i32) -> (i32, i32) {
    %c0_i32 = arith.constant 0 : i32
    %c0_i32_0 = arith.constant 0 : i32
    return %arg0, %c0_i32 : i32, i32
  }
  func.func @transform_2(%arg0: i32) -> (i32, i32) {
    %c0_i32 = arith.constant 0 : i32
    %c0_i32_0 = arith.constant 0 : i32
    return %arg0, %c0_i32 : i32, i32
  }
  func.func @transform_3(%arg0: i32) -> (i32, i32) {
    %c0_i32 = arith.constant 0 : i32
    %c0_i32_0 = arith.constant 0 : i32
    %c0_i32_1 = arith.constant 0 : i32
    return %c0_i32, %c0_i32_0 : i32, i32
  }
  func.func @transform_4(%arg0: i32) -> (i32, i32) {
    %c0_i32 = arith.constant 0 : i32
    %c0_i32_0 = arith.constant 0 : i32
    %c0_i32_1 = arith.constant 0 : i32
    return %c0_i32, %c0_i32_0 : i32, i32
  }
  func.func @transform_5(%arg0: i32) -> (i32, i32) {
    %c0_i32 = arith.constant 0 : i32
    %c0_i32_0 = arith.constant 0 : i32
    %c0_i32_1 = arith.constant 0 : i32
    return %c0_i32, %c0_i32_0 : i32, i32
  }
  func.func @transform_6(%arg0: i32) -> (i32, i32) {
    %c0_i32 = arith.constant 0 : i32
    %c0_i32_0 = arith.constant 0 : i32
    %c0_i32_1 = arith.constant 0 : i32
    return %c0_i32, %c0_i32_0 : i32, i32
  }
  func.func @transform_7(%arg0: i32) -> (i32, i32) {
    %c0_i32 = arith.constant 0 : i32
    %c0_i32_0 = arith.constant 0 : i32
    %c0_i32_1 = arith.constant 0 : i32
    return %c0_i32, %c0_i32_0 : i32, i32
  }
  func.func @transform_8(%arg0: i32) -> (i32, i32) {
    %c0_i32 = arith.constant 0 : i32
    %c0_i32_0 = arith.constant 0 : i32
    return %arg0, %c0_i32 : i32, i32
  }
}

</mosaic_0001>

<bundles_post_ra>
// kernel: tpu_custom_call.1
= control target key start
LH: loop header
LB: loop body
LE: loop exit
PB: predicated region body
PF: predicated region fallthrough
CT: control target
= control target key end

     0   :  { %v980_v2 = vmov 0   ;;  %vm222_vm0 = vcmask 261120   ;;  %s1354_s0 = inlined_call_operand.vmem [shape: bf16[128,32], index: 0, kind: input, shape index: {}]   ;;  %s1355_s1 = inlined_call_operand.vmem [shape: f32[128,1], index: 1, kind: input, shape index: {}]   ;;  %s1356_s2 = inlined_call_operand.vmem [shape: f32[128,1], index: 2, kind: input, shape index: {}]   ;;  %s1357_s3 = inlined_call_operand.vmem [shape: bf16[32,128], index: 3, kind: input, shape index: {}]   ;;  %s1358_s4 = inlined_call_operand.vmem [shape: f32[1,128], index: 4, kind: input, shape index: {}]   ;;  %s1359_s5 = inlined_call_operand.vmem [shape: f32[1,128], index: 5, kind: input, shape index: {}]   ;;  %s1360_s6 = inlined_call_operand.vmem [shape: bf16[128,32], index: 6, kind: input, shape index: {}]   ;;  %s1361_s7 = inlined_call_operand.vmem [shape: f32[1,32], index: 7, kind: input, shape index: {}]   ;;  %s1362_s8 = inlined_call_operand.hbm [shape: f32[4,128], index: 8, kind: output, shape index: {}]  }
   0x1   :  { %v938_v0 = vld [vmem:[%s1357_s3] sm:$0xff]   ;;  %v939_v1 = vld [vmem:[%s1357_s3 + $0x8] sm:$0xff]   ;;  %937 = vset.pattern.permute.xlu1 %v980_v2  ;;  %936 = vset.pattern.permute.xlu0 %v980_v2  ;;  %v942_v9 = vld [vmem:[%s1354_s0 + $0x10] sm:$0xff]  }
   0x2   :  { %889 = vmatprep.subr.bf16.mxu0 %v938_v0  ;;  %v940_v3 = vld [vmem:[%s1354_s0] sm:$0xff]   ;;  %v941_v6 = vld [vmem:[%s1354_s0 + $0x8] sm:$0xff]   ;;  %v61_v10 = vld [vmem:[%s1355_s1 + $0x50] sm:$0xff] }
   0x3   :  { %890 = vmatpush3.bf16.msra.mxu0 %v938_v0  ;;  %v59_v4 = vld [vmem:[%s1355_s1 + $0x40] sm:$0xff]  ;;  %893 = vmatprep.mubr.msk.bf16.mxu0 %vm222_vm0, %v940_v3  ;;  %v60_v7 = vld [vmem:[%s1355_s1 + $0x48] sm:$0xff]  ;;  %v53_v11 = vld [vmem:[%s1355_s1 + $0x10] sm:$0xff] }
   0x4   :  { %v51_v5 = vld [vmem:[%s1355_s1] sm:$0xff]  ;;  %891 = vmatprep.subr.bf16.mxu0 %v939_v1  ;;  %110 = vperm.xlu1 %937, %v59_v4   ;;  %v52_v8 = vld [vmem:[%s1355_s1 + $0x8] sm:$0xff]  ;;  %v943_v12 = vld [vmem:[%s1354_s0 + $0x18] sm:$0xff]  }
   0x5   :  { %70 = vperm.xlu0 %936, %v51_v5   ;;  %v62_v13 = vld [vmem:[%s1355_s1 + $0x58] sm:$0xff]  ;;  %v944_v15 = vld [vmem:[%s1354_s0 + $0x20] sm:$0xff]   ;;  %v945_v18 = vld [vmem:[%s1354_s0 + $0x28] sm:$0xff]  }
   0x6   :  { %v54_v14 = vld [vmem:[%s1355_s1 + $0x18] sm:$0xff]  ;;  %v63_v16 = vld [vmem:[%s1355_s1 + $0x60] sm:$0xff]  ;;  %v64_v19 = vld [vmem:[%s1355_s1 + $0x68] sm:$0xff] }
   0x7   :  { %892 = vmatpush3.bf16.msra.mxu0 %v939_v1  ;;  %v55_v17 = vld [vmem:[%s1355_s1 + $0x20] sm:$0xff]  ;;  %v56_v20 = vld [vmem:[%s1355_s1 + $0x28] sm:$0xff]  ;;  %v946_v21 = vld [vmem:[%s1354_s0 + $0x30] sm:$0xff]  }
   0x8   :  { %115 = vperm.xlu1 %937, %v60_v7   ;;  %v65_v22 = vld [vmem:[%s1355_s1 + $0x70] sm:$0xff] }
   0x9   :  { %75 = vperm.xlu0 %936, %v52_v8   ;;  %v57_v23 = vld [vmem:[%s1355_s1 + $0x30] sm:$0xff] }
   0xa   :  { %894 = vmatmul.mubr.msk.bf16.vlgmr.msra.gmra.mrb[0].mxu0 %vm222_vm0, %v941_v6 }
   0xb   :  { %897 = vmatprep.mubr.msk.bf16.mxu0 %vm222_vm0, %v942_v9 }
   0xc   :  { %120 = vperm.xlu1 %937, %v61_v10  }
   0xd   :  { %80 = vperm.xlu0 %936, %v53_v11  }
  0x10   :  { %125 = vperm.xlu1 %937, %v62_v13  }
  0x11   :  { %85 = vperm.xlu0 %936, %v54_v14  }
  0x12   :  { %898 = vmatmul.mubr.msk.bf16.gmra.mrb[4].mxu0 %vm222_vm0, %v943_v12 }
  0x13   :  { %901 = vmatprep.mubr.msk.bf16.mxu0 %vm222_vm0, %v944_v15 }
  0x14   :  { %130 = vperm.xlu1 %937, %v63_v16  }
  0x15   :  { %90 = vperm.xlu0 %936, %v55_v17  }
  0x18   :  { %135 = vperm.xlu1 %937, %v64_v19  }
  0x19   :  { %95 = vperm.xlu0 %936, %v56_v20  }
  0x1a   :  { %902 = vmatmul.mubr.msk.bf16.gmra.mrb[8].mxu0 %vm222_vm0, %v945_v18 }
  0x1b   :  { %13 = vsyncpa [#allocation3], 0  ;;  %905 = vmatprep.mubr.msk.bf16.mxu0 %vm222_vm0, %v946_v21  ;;  %v947_v24 = vld [vmem:[%s1354_s0 + $0x38] sm:$0xff]   ;;  %v416_v27 = vld [vmem:[%s1356_s2 + $0x8] sm:$0xff]  ;;  %v981_v43 = vmov 0.0   ;;  %vm982_vm1 = vmmov 0  }
  0x1c   :  { %140 = vperm.xlu1 %937, %v65_v22   ;;  %v66_v25 = vld [vmem:[%s1355_s1 + $0x78] sm:$0xff]  ;;  %v415_v28 = vld [vmem:[%s1356_s2] sm:$0xff]  ;;  %v424_v29 = vld [vmem:[%s1356_s2 + $0x48] sm:$0xff]  ;;  %909 = vmatprep.subr.bf16.mxu1 %v981_v43  ;;  %s983_s11 = smov 32   ;;  %s984_s12 = smov 64  }
  0x1d   :  { %100 = vperm.xlu0 %936, %v57_v23   ;;  %v58_v26 = vld [vmem:[%s1355_s1 + $0x38] sm:$0xff]  ;;  %v423_v30 = vld [vmem:[%s1356_s2 + $0x40] sm:$0xff]  ;;  %v425_v31 = vld [vmem:[%s1356_s2 + $0x50] sm:$0xff]  ;;  %925 = vmatprep.mubr.msk.bf16.mxu1 %vm982_vm1, %v981_v43  ;;  %s985_s13 = smov 96  }
  0x1e   :  { %v417_v32 = vld [vmem:[%s1356_s2 + $0x10] sm:$0xff]  ;;  %v426_v33 = vld [vmem:[%s1356_s2 + $0x58] sm:$0xff]  ;;  %v427_v35 = vld [vmem:[%s1356_s2 + $0x60] sm:$0xff] }
  0x1f   :  { %v418_v34 = vld [vmem:[%s1356_s2 + $0x18] sm:$0xff]  ;;  %v419_v36 = vld [vmem:[%s1356_s2 + $0x20] sm:$0xff]  ;;  %v428_v37 = vld [vmem:[%s1356_s2 + $0x68] sm:$0xff] }
  0x20   :  { %145 = vperm.xlu1 %937, %v66_v25   ;;  %v420_v38 = vld [vmem:[%s1356_s2 + $0x28] sm:$0xff]  ;;  %v429_v39 = vld [vmem:[%s1356_s2 + $0x70] sm:$0xff]  ;;  %v430_v41 = vld [vmem:[%s1356_s2 + $0x78] sm:$0xff] }
  0x21   :  { %105 = vperm.xlu0 %936, %v58_v26   ;;  %v421_v40 = vld [vmem:[%s1356_s2 + $0x30] sm:$0xff]  ;;  %v422_v42 = vld [vmem:[%s1356_s2 + $0x38] sm:$0xff]  ;;  %v948_v44 = vld [vmem:[%s1360_s6] sm:$0xff]  }
  0x22   :  { %906 = vmatmul.mubr.msk.bf16.gmra.mrb[12].mxu0 %vm222_vm0, %v947_v24  ;;  %910 = vmatpush3.bf16.msra.mxu1 %v948_v44  ;;  %v949_v45 = vld [vmem:[%s1360_s6 + $0x8] sm:$0xff]   ;;  %v950_v46 = vld [vmem:[%s1360_s6 + $0x10] sm:$0xff]   ;;  %v951_v47 = vld [vmem:[%s1360_s6 + $0x18] sm:$0xff]  }
  0x23   :  { %911 = vmatprep.subr.bf16.mxu1 %v981_v43  ;;  %v952_v49 = vld [vmem:[%s1360_s6 + $0x20] sm:$0xff]   ;;  %v953_v50 = vld [vmem:[%s1360_s6 + $0x28] sm:$0xff]   ;;  %v954_v52 = vld [vmem:[%s1360_s6 + $0x30] sm:$0xff]  }
  0x24   :  { %438 = vperm.xlu1 %937, %v416_v27   ;;  %v955_v53 = vld [vmem:[%s1360_s6 + $0x38] sm:$0xff]   ;;  %v1201_v6 = vld [vmem:[%s1358_s4] ss:$0 sm:$0xff] }
  0x25   :  { %433 = vperm.xlu0 %936, %v415_v28   ;;  %v1210_v12 = vld [vmem:[%s1359_s5] ss:$0 sm:$0xff] }
  0x26   :  { %912 = vmatpush3.bf16.msra.mxu1 %v949_v45 }
  0x27   :  { %913 = vmatprep.subr.bf16.mxu1 %v981_v43 }
  0x28   :  { %478 = vperm.xlu1 %937, %v424_v29  }
  0x29   :  { %473 = vperm.xlu0 %936, %v423_v30  }
  0x2a   :  { %914 = vmatpush3.bf16.msra.mxu1 %v950_v46 }
  0x2b   :  { %915 = vmatprep.subr.bf16.mxu1 %v981_v43 }
  0x2c   :  { %483 = vperm.xlu1 %937, %v425_v31  }
  0x2d   :  { %443 = vperm.xlu0 %936, %v417_v32  }
  0x2e   :  { %916 = vmatpush3.bf16.msra.mxu1 %v951_v47 }
  0x2f   :  { %917 = vmatprep.subr.bf16.mxu1 %v981_v43 }
  0x30   :  { %488 = vperm.xlu1 %937, %v426_v33  }
  0x31   :  { %448 = vperm.xlu0 %936, %v418_v34  }
  0x32   :  { %918 = vmatpush3.bf16.msra.mxu1 %v952_v49 }
  0x33   :  { %919 = vmatprep.subr.bf16.mxu1 %v981_v43 }
  0x34   :  { %493 = vperm.xlu1 %937, %v427_v35  }
  0x35   :  { %453 = vperm.xlu0 %936, %v419_v36  }
  0x36   :  { %920 = vmatpush3.bf16.msra.mxu1 %v953_v50 }
  0x37   :  { %921 = vmatprep.subr.bf16.mxu1 %v981_v43 }
  0x38   :  { %498 = vperm.xlu1 %937, %v428_v37  }
  0x39   :  { %458 = vperm.xlu0 %936, %v420_v38  }
  0x3a   :  { %922 = vmatpush3.bf16.msra.mxu1 %v954_v52 }
  0x3b   :  { %923 = vmatprep.subr.bf16.mxu1 %v981_v43 }
  0x3c   :  { %503 = vperm.xlu1 %937, %v429_v39  }
  0x3d   :  { %463 = vperm.xlu0 %936, %v421_v40  }
  0x3e   :  { %924 = vmatpush3.bf16.msra.mxu1 %v955_v53 }
  0x40   :  { %508 = vperm.xlu1 %937, %v430_v41  }
  0x41   :  { %468 = vperm.xlu0 %936, %v422_v42  }
  0x83   :  { %v111_v57 = vpop.permute.xlu1 %110 }
  0x84   :  { %v71_v48 = vpop.permute.xlu0 %70  ;;  %v1217_v20 = vmul.f32 %v1201_v6, %v111_v57 }
  0x85   :  { %v154_v10 = vmul.f32 %v1201_v6, %v71_v48 }
  0x87   :  { %v116_v59 = vpop.permute.xlu1 %115 }
  0x88   :  { %v76_v51 = vpop.permute.xlu0 %75  ;;  %v1220_v21 = vmul.f32 %v1201_v6, %v116_v59 }
  0x89   :  { %v155_v16 = vmul.f32 %v1201_v6, %v76_v51 }
  0x8b   :  { %v121_v61 = vpop.permute.xlu1 %120 }
  0x8c   :  { %v81_v54 = vpop.permute.xlu0 %80  ;;  %v1224_v26 = vmul.f32 %v1201_v6, %v121_v61 }
  0x8d   :  { %v156_v9 = vmul.f32 %v1201_v6, %v81_v54 }
  0x8f   :  { %v126_v63 = vpop.permute.xlu1 %125 }
  0x90   :  { %v86_v55 = vpop.permute.xlu0 %85  ;;  %v1227_v27 = vmul.f32 %v1201_v6, %v126_v63 }
  0x91   :  { %v157_v13 = vmul.f32 %v1201_v6, %v86_v55 }
  0x93   :  { %v1190_v1 = vpop.permute.xlu1 %130 }
  0x94   :  { %v91_v56 = vpop.permute.xlu0 %90 }
  0x95   :  { %v158_v30 = vmul.f32 %v1201_v6, %v91_v56 }
  0x97   :  { %v1194_v3 = vpop.permute.xlu1 %135 }
  0x98   :  { %v96_v58 = vpop.permute.xlu0 %95 }
  0x99   :  { %v159_v33 = vmul.f32 %v1201_v6, %v96_v58 }
  0x9b   :  { %v1196_v5 = vpop.permute.xlu1 %140 }
  0x9c   :  { %v101_v60 = vpop.permute.xlu0 %100 }
  0x9d   :  { %v160_v36 = vmul.f32 %v1201_v6, %v101_v60 }
  0x9f   :  { %v1203_v8 = vpop.permute.xlu1 %145 }
  0xa0   :  { %v106_v62 = vpop.permute.xlu0 %105 }
  0xa1   :  { %v161_v44 = vmul.f32 %v1201_v6, %v106_v62 }
  0xa3   :  { %v439_v22 = vpop.permute.xlu1 %438 }
  0xa4   :  { %v434_v0 = vpop.permute.xlu0 %433 }
  0xa7   :  { %v1238_v45 = vpop.permute.xlu1 %478 }
  0xa8   :  { %v1192_v2 = vpop.permute.xlu0 %473 }
  0xac   :  { %v444_v4 = vpop.permute.xlu0 %443 }
  0xb0   :  { %v449_v7 = vpop.permute.xlu0 %448 }
  0xb4   :  { %v1214_v17 = vpop.permute.xlu0 %453 }
  0xb8   :  { %v1235_v39 = vpop.permute.xlu0 %458 }
  0xdd   :  { %v895_v11 = vpop.f32.mrb[0].mxu0 }
  0xde   :  { %v290_v14 = vadd.f32 %v895_v11, %v156_v9  ;;  %v281_v15 = vpop.f32.mrb[1].mxu0 }
  0xdf   :  { %v282_v18 = vadd.f32 %v281_v15, %v154_v10  ;;  %v896_v19 = vpop.f32.mrb[2].mxu0  ;;  %v464_v10 = vpop.permute.xlu0 %463 }
  0xe0   :  { %v353_v23 = vadd.f32 %v1210_v12, %v290_v14  ;;  %v293_v24 = vadd.f32 %v896_v19, %v157_v13  ;;  %v284_v25 = vpop.f32.mrb[3].mxu0  ;;  %v1242_v14 = vpop.permute.xlu1 %483 }
  0xe1   :  { %v351_v28 = vadd.f32 %v1210_v12, %v282_v18  ;;  %v285_v29 = vadd.f32 %v284_v25, %v155_v16 }
  0xe2   :  { %vm369_vm2 = vcmp.gt.f32.partialorder %v353_v23, 0.0  ;;  %v385_v31 = vmul.f32 0.01, %v353_v23  ;;  %v354_v32 = vadd.f32 %v1210_v12, %v293_v24 }
  0xe3   :  { %vm367_vm3 = vcmp.gt.f32.partialorder %v351_v28, 0.0  ;;  %v383_v34 = vmul.f32 0.01, %v351_v28  ;;  %v352_v35 = vadd.f32 %v1210_v12, %v285_v29 }
  0xe4   :  { %v401_v37 = vsel %vm369_vm2, %v353_v23, %v385_v31  ;;  %vm370_vm4 = vcmp.gt.f32.partialorder %v354_v32, 0.0  ;;  %v386_v38 = vmul.f32 0.01, %v354_v32  ;;  %vm694_vm2 = vcmask 1041409  }
  0xe5   :  { %v513_v40 = vmul.f32 %v444_v4, %v401_v37  ;;  %v399_v41 = vsel %vm367_vm3, %v351_v28, %v383_v34  ;;  %vm368_vm5 = vcmp.gt.f32.partialorder %v352_v35, 0.0  ;;  %v384_v42 = vmul.f32 0.01, %v352_v35  ;;  %v899_v43 = vpop.f32.mrb[4].mxu0 }
  0xe6   :  { %v511_v46 = vmul.f32 %v434_v0, %v399_v41  ;;  %v402_v47 = vsel %vm370_vm4, %v354_v32, %v386_v38  ;;  %v306_v48 = vadd.f32 %v899_v43, %v160_v36  ;;  %v297_v49 = vpop.f32.mrb[5].mxu0  ;;  %vm696_vm3 = vcmask 1042434  }
  0xe7   :  { %v539_v50 = vrot.slane %v513_v40, 4  ;;  %v514_v51 = vmul.f32 %v449_v7, %v402_v47  ;;  %v400_v52 = vsel %vm368_vm5, %v352_v35, %v384_v42  ;;  %v298_v53 = vadd.f32 %v297_v49, %v158_v30  ;;  %v900_v54 = vpop.f32.mrb[6].mxu0 }
  0xe8   :  { %v527_v55 = vrot.slane %v511_v46, 4  ;;  %v512_v56 = vmul.f32 %v439_v22, %v400_v52  ;;  %v357_v57 = vadd.f32 %v1210_v12, %v306_v48  ;;  %v309_v58 = vadd.f32 %v900_v54, %v161_v44  ;;  %v300_v59 = vpop.f32.mrb[7].mxu0  ;;  %v469_v44 = vpop.permute.xlu0 %468 }
  0xe9   :  { %v540_v60 = vadd.f32 %v539_v50, %v513_v40  ;;  %v545_v61 = vrot.slane %v514_v51, 4  ;;  %v355_v62 = vadd.f32 %v1210_v12, %v298_v53  ;;  %v301_v63 = vadd.f32 %v300_v59, %v159_v33 }
  0xea   :  { %v528_v0 = vadd.f32 %v527_v55, %v511_v46  ;;  %v533_v4 = vrot.slane %v512_v56, 4  ;;  %vm373_vm6 = vcmp.gt.f32.partialorder %v357_v57, 0.0  ;;  %v389_v9 = vmul.f32 0.01, %v357_v57 }
  0xeb   :  { %v541_v7 = vrot.slane %v540_v60, 2  ;;  %v546_v11 = vadd.f32 %v545_v61, %v514_v51  ;;  %vm371_vm7 = vcmp.gt.f32.partialorder %v355_v62, 0.0  ;;  %v387_v13 = vmul.f32 0.01, %v355_v62 }
  0xec   :  { %v529_v15 = vrot.slane %v528_v0, 2  ;;  %v534_v16 = vadd.f32 %v533_v4, %v512_v56  ;;  %v405_v18 = vsel %vm373_vm6, %v357_v57, %v389_v9  ;;  %v358_v19 = vadd.f32 %v1210_v12, %v309_v58 }
  0xed   :  { %v542_v22 = vadd.f32 %v541_v7, %v540_v60  ;;  %v547_v23 = vrot.slane %v546_v11, 2  ;;  %v517_v24 = vmul.f32 %v464_v10, %v405_v18  ;;  %v403_v25 = vsel %vm371_vm7, %v355_v62, %v387_v13  ;;  %v903_v28 = vpop.f32.mrb[8].mxu0 }
  0xee   :  { %v530_v29 = vadd.f32 %v529_v15, %v528_v0  ;;  %v535_v30 = vrot.slane %v534_v16, 2  ;;  %v515_v31 = vmul.f32 %v1214_v17, %v403_v25  ;;  %vm374_vm8 = vcmp.gt.f32.partialorder %v358_v19, 0.0  ;;  %v313_v32 = vpop.f32.mrb[9].mxu0  ;;  %v1248_v17 = vpop.permute.xlu1 %488 }
  0xef   :  { %v543_v33 = vrot.slane %v542_v22, 1  ;;  %v548_v34 = vadd.f32 %v547_v23, %v546_v11  ;;  %v563_v35 = vrot.slane %v517_v24, 4  ;;  %v390_v36 = vmul.f32 0.01, %v358_v19  ;;  %v904_v37 = vpop.f32.mrb[10].mxu0 }
  0xf0   :  { %v531_v38 = vrot.slane %v530_v29, 1  ;;  %v536_v40 = vadd.f32 %v535_v30, %v534_v16  ;;  %v551_v41 = vrot.slane %v515_v31, 4  ;;  %v356_v42 = vadd.f32 %v1210_v12, %v301_v63  ;;  %v316_v43 = vpop.f32.mrb[11].mxu0 }
  0xf1   :  { %v544_v46 = vadd.f32 %v543_v33, %v542_v22  ;;  %v549_v47 = vrot.slane %v548_v34, 1  ;;  %v564_v48 = vadd.f32 %v563_v35, %v517_v24  ;;  %v406_v49 = vsel %vm374_vm8, %v358_v19, %v390_v36 }
  0xf2   :  { %v532_v50 = vadd.f32 %v531_v38, %v530_v29  ;;  %v537_v51 = vrot.slane %v536_v40, 1  ;;  %v552_v52 = vadd.f32 %v551_v41, %v515_v31  ;;  %v518_v53 = vmul.f32 %v469_v44, %v406_v49  ;;  %v1270_v19 = vpop.permute.xlu1 %493 }
  0xf3   :  { %v625_v54 = vpack.c.bf16 %v544_v46, %v544_v46  ;;  %v550_v55 = vadd.f32 %v549_v47, %v548_v34  ;;  %v565_v56 = vrot.slane %v564_v48, 2  ;;  %vm372_vm9 = vcmp.gt.f32.partialorder %v356_v42, 0.0 }
  0xf4   :  { %v623_v57 = vpack.c.bf16 %v532_v50, %v532_v50  ;;  %v1250_v58 = vadd.f32 %v537_v51, %v536_v40  ;;  %v553_v59 = vrot.slane %v552_v52, 2  ;;  %v569_v60 = vrot.slane %v518_v53, 4 }
  0xf5   :  { %v166_v61 = vmul.f32 %v1201_v6, %v1190_v1  ;;  %v1256_v62 = vmul.f32 %v1201_v6, %v1194_v3  ;;  %v626_v63 = vpack.c.bf16 %v550_v55, %v550_v55  ;;  %v388_v0 = vmul.f32 0.01, %v356_v42  ;;  %v907_v4 = vpop.f32.mrb[12].mxu0 }
  0xf6   :  { %v168_v9 = vmul.f32 %v1201_v6, %v1196_v5  ;;  %v169_v10 = vmul.f32 %v1201_v6, %v1203_v8  ;;  %v1262_v7 = vadd.f32 %v565_v56, %v564_v48  ;;  %v554_v11 = vadd.f32 %v553_v59, %v552_v52  ;;  %v329_v13 = vpop.f32.mrb[13].mxu0 }
  0xf7   :  { %v1264_v15 = vunpack.c.l.b16 %v625_v54  ;;  %v1266_v1 = vunpack.c.l.b16 %v623_v57  ;;  %v404_v3 = vsel %vm372_vm9, %v356_v42, %v388_v0  ;;  %v322_v16 = vadd.f32 %v903_v28, %v1224_v26  ;;  %v908_v18 = vpop.f32.mrb[14].mxu0 }
  0xf8   :  { %v1272_v22 = vunpack.c.l.b16 %v626_v63  ;;  %v624_v5 = vpack.c.bf16 %v1250_v58, %v1250_v58  ;;  %v1276_v6 = vadd.f32 %v569_v60, %v518_v53  ;;  %v516_v8 = vmul.f32 %v1235_v39, %v404_v3  ;;  %v1279_v23 = vpop.f32.mrb[15].mxu0 }
  0xf9   :  { %v361_v24 = vadd.f32 %v1210_v12, %v322_v16  ;;  %v314_v25 = vadd.f32 %v313_v32, %v1217_v20  ;;  %v325_v26 = vadd.f32 %v904_v37, %v1227_v27  ;;  %v317_v28 = vadd.f32 %v316_v43, %v1220_v21  ;;  %v1291_v37 = vpop.permute.xlu1 %498 }
  0xfa   :  { %v567_v29 = vrot.slane %v1262_v7, 1  ;;  %v555_v30 = vrot.slane %v554_v11, 1  ;;  %v557_v31 = vrot.slane %v516_v8, 4  ;;  %v338_v33 = vadd.f32 %v907_v4, %v168_v9 }
  0xfb   :  { %vm377_vm10 = vcmp.gt.f32.partialorder %v361_v24, 0.0  ;;  %v393_v34 = vmul.f32 0.01, %v361_v24  ;;  %v359_v35 = vadd.f32 %v1210_v12, %v314_v25  ;;  %v362_v39 = vadd.f32 %v1210_v12, %v325_v26 }
  0xfc   :  { %v571_v36 = vrot.slane %v1276_v6, 2  ;;  %v558_v38 = vadd.f32 %v557_v31, %v516_v8  ;;  %v360_v20 = vadd.f32 %v1210_v12, %v317_v28  ;;  %v365_v27 = vadd.f32 %v1210_v12, %v338_v33 }
  0xfd   :  { %v409_v32 = vsel %vm377_vm10, %v361_v24, %v393_v34  ;;  %vm375_vm11 = vcmp.gt.f32.partialorder %v359_v35, 0.0  ;;  %v391_v21 = vmul.f32 0.01, %v359_v35  ;;  %vm378_vm12 = vcmp.gt.f32.partialorder %v362_v39, 0.0  ;;  %v504_v4 = vpop.permute.xlu1 %503 }
  0xfe   :  { %v1293_v40 = vadd.f32 %v555_v30, %v554_v11  ;;  %v559_v41 = vrot.slane %v558_v38, 2  ;;  %v521_v42 = vmul.f32 %v1242_v14, %v409_v32  ;;  %v394_v43 = vmul.f32 0.01, %v362_v39 }
  0xff   :  { %v407_v44 = vsel %vm375_vm11, %v359_v35, %v391_v21  ;;  %vm376_vm13 = vcmp.gt.f32.partialorder %v360_v20, 0.0  ;;  %v392_v46 = vmul.f32 0.01, %v360_v20  ;;  %vm381_vm14 = vcmp.gt.f32.partialorder %v365_v27, 0.0 }
 0x100   :  { %v1296_v47 = vadd.f32 %v559_v41, %v558_v38  ;;  %v587_v48 = vrot.slane %v521_v42, 4  ;;  %v519_v49 = vmul.f32 %v1192_v2, %v407_v44  ;;  %v410_v50 = vsel %vm378_vm12, %v362_v39, %v394_v43 }
 0x101   :  { %v522_v51 = vmul.f32 %v1248_v17, %v410_v50  ;;  %v408_v52 = vsel %vm376_vm13, %v360_v20, %v392_v46  ;;  %v397_v53 = vmul.f32 0.01, %v365_v27  ;;  %v330_v54 = vadd.f32 %v329_v13, %v166_v61 }
 0x102   :  { %v627_v55 = vpack.c.bf16 %v1293_v40, %v1293_v40  ;;  %v588_v14 = vadd.f32 %v587_v48, %v521_v42  ;;  %v575_v56 = vrot.slane %v519_v49, 4  ;;  %v520_v57 = vmul.f32 %v1238_v45, %v408_v52 }
 0x103   :  { %v593_v59 = vrot.slane %v522_v51, 4  ;;  %v413_v60 = vsel %vm381_vm14, %v365_v27, %v397_v53  ;;  %v363_v63 = vadd.f32 %v1210_v12, %v330_v54  ;;  %v341_v0 = vadd.f32 %v908_v18, %v169_v10 }
 0x104   :  { %v561_v2 = vrot.slane %v1296_v47, 1  ;;  %v589_v9 = vrot.slane %v588_v14, 2  ;;  %v576_v17 = vadd.f32 %v575_v56, %v519_v49  ;;  %v581_v11 = vrot.slane %v520_v57, 4 }
 0x105   :  { %v594_v3 = vadd.f32 %v593_v59, %v522_v51  ;;  %v525_v61 = vmul.f32 %v504_v4, %v413_v60  ;;  %vm379_vm15 = vcmp.gt.f32.partialorder %v363_v63, 0.0  ;;  %v395_v13 = vmul.f32 0.01, %v363_v63 }
 0x106   :  { %v590_v16 = vadd.f32 %v589_v9, %v588_v14  ;;  %v577_v8 = vrot.slane %v576_v17, 2  ;;  %v582_v24 = vadd.f32 %v581_v11, %v520_v57  ;;  %v366_v45 = vadd.f32 %v1210_v12, %v341_v0 }
 0x107   :  { %v595_v25 = vrot.slane %v594_v3, 2  ;;  %v611_v26 = vrot.slane %v525_v61, 4  ;;  %v411_v28 = vsel %vm379_vm15, %v363_v63, %v395_v13  ;;  %v333_v10 = vadd.f32 %v1279_v23, %v1256_v62  ;;  %v509_v62 = vpop.permute.xlu1 %508 }
 0x108   :  { %v591_v18 = vrot.slane %v590_v16, 1  ;;  %v578_v30 = vadd.f32 %v577_v8, %v576_v17  ;;  %v583_v31 = vrot.slane %v582_v24, 2  ;;  %v523_v33 = vmul.f32 %v1270_v19, %v411_v28 }
 0x109   :  { %v596_v34 = vadd.f32 %v595_v25, %v594_v3  ;;  %v612_v35 = vadd.f32 %v611_v26, %v525_v61  ;;  %vm382_vm1 = vcmp.gt.f32.partialorder %v366_v45, 0.0  ;;  %v398_v39 = vmul.f32 0.01, %v366_v45 }
 0x10a   :  { %v592_v38 = vadd.f32 %v591_v18, %v590_v16  ;;  %v579_v20 = vrot.slane %v578_v30, 1  ;;  %v584_v27 = vadd.f32 %v583_v31, %v582_v24  ;;  %v599_v32 = vrot.slane %v523_v33, 4 }
 0x10b   :  { %v597_v21 = vrot.slane %v596_v34, 1  ;;  %v613_v40 = vrot.slane %v612_v35, 2  ;;  %v414_v41 = vsel %vm382_vm1, %v366_v45, %v398_v39  ;;  %v364_v42 = vadd.f32 %v1210_v12, %v333_v10 }
 0x10c   :  { %v679_v19 = vunpack.c.l.b16 %v624_v5  ;;  %v633_v23 = vpack.c.bf16 %v592_v38, %v592_v38  ;;  %v585_v43 = vrot.slane %v584_v27, 1  ;;  %v600_v44 = vadd.f32 %v599_v32, %v523_v33 }
 0x10d   :  { %vm698_vm4 = vcmask 1043459   ;;  %v682_v46 = vunpack.c.l.b16 %v627_v55  ;;  %v572_v48 = vadd.f32 %v571_v36, %v1276_v6  ;;  %v580_v49 = vadd.f32 %v579_v20, %v578_v30 }
 0x10e   :  { %v526_v50 = vmul.f32 %v509_v62, %v414_v41  ;;  %vm700_vm5 = vcmask 1044484   ;;  %v598_v51 = vadd.f32 %v597_v21, %v596_v34  ;;  %v586_v12 = vadd.f32 %v585_v43, %v584_v27 }
 0x10f   :  { %v601_v52 = vrot.slane %v600_v44, 2  ;;  %vm380_vm6 = vcmp.gt.f32.partialorder %v364_v42, 0.0  ;;  %vm702_vm7 = vcmask 1045509   ;;  %v562_v58 = vadd.f32 %v561_v2, %v1296_v47 }
 0x110   :  { %v614_v5 = vadd.f32 %v613_v40, %v612_v35  ;;  %v617_v53 = vrot.slane %v526_v50, 4  ;;  %v396_v54 = vmul.f32 0.01, %v364_v42  ;;  %vm704_vm8 = vcmask 1046534  }
 0x111   :  { %v688_v14 = vunpack.c.l.b16 %v633_v23  ;;  %v632_v55 = vpack.c.bf16 %v586_v12, %v586_v12  ;;  %v602_v56 = vadd.f32 %v601_v52, %v600_v44  ;;  %v568_v6 = vadd.f32 %v567_v29, %v1262_v7 }
 0x112   :  { %vm706_vm9 = vcmask 1047559   ;;  %v631_v36 = vpack.c.bf16 %v580_v49, %v580_v49  ;;  %v618_v57 = vadd.f32 %v617_v53, %v526_v50  ;;  %v412_v59 = vsel %vm380_vm6, %v364_v42, %v396_v54 }
 0x113   :  { %v573_v60 = vrot.slane %v572_v48, 1  ;;  %v634_v63 = vpack.c.bf16 %v598_v51, %v598_v51  ;;  %v687_v0 = vunpack.c.l.b16 %v632_v55  ;;  %v603_v4 = vrot.slane %v602_v56, 1  ;;  %v861_v51 = vld [vmem:[%s1361_s7] ss:$0 sm:$0xff]  ;;  %s986_s7 = smov [#allocation2]  }
 0x114   :  { %v524_v47 = vmul.f32 %v1291_v37, %v412_v59  ;;  %v619_v2 = vrot.slane %v618_v57, 2  ;;  %v628_v17 = vpack.c.bf16 %v562_v58, %v562_v58  ;;  %v629_v11 = vpack.c.bf16 %v568_v6, %v568_v6  ;;  %s833_s14 = sshll.u32 %s986_s7, 4  ;;  %s834_s14 = int_to_ptr.vmem [resolvable:$true] %s833_s14 }
 0x115   :  { %v574_v9 = vadd.f32 %v573_v60, %v572_v48  ;;  %v615_v3 = vrot.slane %v614_v5, 1  ;;  %v604_v61 = vadd.f32 %v603_v4, %v602_v56  ;;  %v695_v7 = vsel %vm694_vm2, %v679_v19, %v1266_v1  ;;  %s956_s0 = scalar_lea.vmem %s834_s14, 64  ;;  %p961_p1 = scmp.lt.s32.totalorder %s834_s14, %s834_s14 }
 0x116   :  { %v605_v13 = vrot.slane %v524_v47, 4  ;;  %v686_v29 = vunpack.c.l.b16 %v631_v36  ;;  %v620_v16 = vadd.f32 %v619_v2, %v618_v57  ;;  %v683_v24 = vunpack.c.l.b16 %v628_v17  ;;  %p957_p0 = scmp.ne.s32.totalorder %s834_s14, %s956_s0  ;;  %p962_p2 = scmp.lt.s32.totalorder %s956_s0, %s956_s0 }
 0x117   :  { %v630_v8 = vpack.c.bf16 %v574_v9, %v574_v9  ;;  %v689_v45 = vunpack.c.l.b16 %v634_v63  ;;  %v635_v25 = vpack.c.bf16 %v604_v61, %v604_v61  ;;  %v697_v37 = vsel %vm696_vm3, %v1264_v15, %v695_v7 }
 0x118   :  { %v606_v26 = vadd.f32 %v605_v13, %v524_v47  ;;  %v621_v28 = vrot.slane %v620_v16, 1  ;;  %v684_v10 = vunpack.c.l.b16 %v629_v11  ;;  %v699_v18 = vsel %vm698_vm4, %v1272_v22, %v697_v37  ;;  %p963_p3 = por %p962_p2, %p961_p1 }
 0x119   :  { %v708_v30 = vsel %vm694_vm2, %v687_v0, %v686_v29  ;;  %v690_v31 = vunpack.c.l.b16 %v635_v25  ;;  %v701_v1 = vsel %vm700_vm5, %v682_v46, %v699_v18  ;;  %v685_v35 = vunpack.c.l.b16 %v630_v8 }
 0x11a   :  { %v607_v33 = vrot.slane %v606_v26, 2  ;;  %v709_v34 = vsel %vm696_vm3, %v688_v14, %v708_v30  ;;  %v703_v39 = vsel %vm702_vm7, %v683_v24, %v701_v1  ;;  %v616_v32 = vadd.f32 %v615_v3, %v614_v5  ;;  %p964_p4 = pnand %p963_p3, %p957_p0 }
 0x11b   :  { %v710_v38 = vsel %vm698_vm4, %v689_v45, %v709_v34  ;;  %v705_v15 = vsel %vm704_vm8, %v684_v10, %v703_v39  ;;  %v622_v40 = vadd.f32 %v621_v28, %v620_v16  ;;  %vm822_vm10 = vcmask 523264  }
 0x11c   :  { %v608_v20 = vadd.f32 %v607_v33, %v606_v26  ;;  %v711_v27 = vsel %vm700_vm5, %v690_v31, %v710_v38  ;;  %v707_v22 = vsel %vm706_vm9, %v685_v35, %v705_v15  ;;  %v637_v42 = vpack.c.bf16 %v616_v32, %v616_v32 }
 0x11d   :  { %v638_v19 = vpack.c.bf16 %v622_v40, %v622_v40  ;;  %vm824_vm11 = vcmask 785408  }
 0x11e   :  { %v609_v21 = vrot.slane %v608_v20, 1  ;;  %v692_v43 = vunpack.c.l.b16 %v637_v42 }
 0x11f   :  { %v693_v44 = vunpack.c.l.b16 %v638_v19 }
 0x120   :  { %v610_v41 = vadd.f32 %v609_v21, %v608_v20 }
 0x122   :  { %v636_v62 = vpack.c.bf16 %v610_v41, %v610_v41 }
 0x124   :  { %v691_v23 = vunpack.c.l.b16 %v636_v62 }
 0x126   :  { %v712_v46 = vsel %vm702_vm7, %v691_v23, %v711_v27 }
 0x127   :  { %v713_v48 = vsel %vm704_vm8, %v692_v43, %v712_v46 }
 0x128   :  { %v714_v49 = vsel %vm706_vm9, %v693_v44, %v713_v48 }
 0x129   :  { %v715_v50 = vpack.c.b16 %v714_v49, %v707_v22 }
 0x12b   :  { %926 = vmatmul.mubr.bf16.vlgmr.msra.gmra.mrb[0].mxu1 %v715_v50 }
 0x1fe   :  { %v799_v12 = vpop.f32.mrb[0].mxu1 }
 0x1ff   :  { %v800_v52 = vadd.f32 %v861_v51, %v799_v12  ;;  %v927_v58 = vpop.f32.mrb[1].mxu1 }
 0x200   :  { %v802_v5 = vpop.f32.mrb[2].mxu1 }
 0x201   :  { %v806_v53 = vmax.f32 %v800_v52, 0.0  ;;  %v803_v54 = vadd.f32 %v861_v51, %v802_v5  ;;  %v928_v14 = vpop.f32.mrb[3].mxu1 }
 0x203   :  { %v809_v55 = vrot.slane %v806_v53, 4  ;;  %v807_v56 = vmax.f32 %v803_v54, 0.0 }
 0x205   :  { %810 = vrot.lane.b32.xlu0 %v809_v55, %s983_s11  ;;  %814 = vrot.lane.b32.xlu1 %v807_v56, %s984_s12  ;;  %v817_v6 = vrot.slane %v807_v56, 4 }
 0x209   :  { %818 = vrot.lane.b32.xlu0 %v817_v6, %s985_s13 }
 0x277   :  { %v811_v36 = vpop.permute.xlu0 %810  ;;  %v815_v59 = vpop.permute.xlu1 %814 }
 0x278   :  { %v821_v57 = vsel %vm222_vm0, %v806_v53, %v811_v36 }
 0x279   :  { %v823_v60 = vsel %vm822_vm10, %v821_v57, %v815_v59 }
 0x27b   :  { %v819_v63 = vpop.permute.xlu0 %818 }
 0x27c   :  { %v825_v0 = vsel %vm824_vm11, %v823_v60, %v819_v63 }
 0x27d   :  { %826 = vst [vmem:[#allocation2] sm:$0xf] %v825_v0 }
 0x27e   :  { %967 = shalt.err (!%p964_p4)
}
 0x27f   :  { %s968_s1 = scalar_lea.hbm %s1362_s8, 64 }
 0x280   :  { %p969_p5 = scmp.ne.s32.totalorder %s1362_s8, %s968_s1  ;;  %p972_p6 = scmp.lt.u32.totalorder %s968_s1, %s1362_s8 }
 0x282   :  { %p974_p7 = pnand %p972_p6, %p969_p5 }
 0x284   :  { %977 = shalt.err (!%p974_p7)
}
 0x285   :  { %836 = dma.vmem_to_hbm [thread:$0]  %s834_s14, 64, %s1362_s8, [#allocation3]  }
 0x286   :  { %978 = dma.done.wait [#allocation3], 64  }
 0x287   :  { %979 = vsyncadd [#allocation3], 4294967232 }
 0x288   :  { %840 = vsyncpa [#allocation3], 1 }

</bundles_post_ra>
